<compile_context>
chip_gen: v6e
topology: v6e:2x2x1
jax: 0.10.0
libtpu: 0.0.40
codegen_flags: <defaults>
</compile_context>

<pallas_src>
import numpy as np
import jax
import jax.numpy as jnp
from jax import lax
from jax.experimental import pallas as pl
from jax.experimental.pallas import tpu as pltpu

IGNORED_LOGITS_VALUE = -3000.0
_CHUNK = 128  # fixed cumsum chunk width inside the resolve kernels


def _round_up(x, m):
    return ((x + m - 1) // m) * m


# ---------------------------------------------------------------------------
# Pass 1: streamed per-vocab-tile sums of exp((masked logits)/T - m).
# ---------------------------------------------------------------------------
def _make_pass1_kernel(Bt, Vt, nT):
    def kernel(params_ref, logits_ref, tsum_ref):
        ti = pl.program_id(1)
        top_k = params_ref[:, 0:1]
        inv_t = params_ref[:, 1:2]
        m = params_ref[:, 2:3]

        col = (lax.broadcasted_iota(jnp.int32, (Bt, Vt), 1) + ti * Vt
               ).astype(jnp.float32)
        vals = jnp.where(col >= top_k, IGNORED_LOGITS_VALUE,
                         logits_ref[...]) * inv_t
        e = jnp.exp(vals - m)
        tile_sum = jnp.sum(e, axis=-1, keepdims=True)          # (Bt, 1)

        @pl.when(ti == 0)
        def _():
            tsum_ref[...] = jnp.zeros_like(tsum_ref)

        # write this tile's sum into its own column of the resident output
        sel = lax.broadcasted_iota(jnp.int32, (Bt, nT), 1) == ti
        tsum_ref[...] += jnp.where(sel, tile_sum, 0.0)

    return kernel


def _tile_sums(sorted_p, params1, Bt, Vt, nT):
    B_pad = sorted_p.shape[0]
    nB = B_pad // Bt
    vmem_limit = int(min(64 * 2 ** 20, max(16 * 2 ** 20, 8 * Bt * Vt * 4)))
    return pl.pallas_call(
        _make_pass1_kernel(Bt, Vt, nT),
        out_shape=jax.ShapeDtypeStruct((B_pad, nT), jnp.float32),
        grid=(nB, nT),
        in_specs=[
            pl.BlockSpec((Bt, 3), lambda bi, ti: (bi, 0)),     # params (tiny)
            pl.BlockSpec((Bt, Vt), lambda bi, ti: (bi, ti)),   # streamed logits
        ],
        out_specs=pl.BlockSpec((Bt, nT), lambda bi, ti: (bi, 0)),
        compiler_params=pltpu.CompilerParams(
            dimension_semantics=("parallel", "arbitrary"),
            vmem_limit_bytes=vmem_limit),
    )(params1, sorted_p)


# ---------------------------------------------------------------------------
# Resolve kernels: element-level work on a single gathered (B_pad, Vt) tile.
# ---------------------------------------------------------------------------
def _masked_exp(tile, top_k, inv_t, m, col_base, shape):
    col = lax.broadcasted_iota(jnp.int32, shape, 1).astype(jnp.float32) + col_base
    vals = jnp.where(col >= top_k, IGNORED_LOGITS_VALUE, tile) * inv_t
    return jnp.exp(vals - m)


def _chunk_triu(C):
    r = lax.broadcasted_iota(jnp.int32, (C, C), 0)
    c = lax.broadcasted_iota(jnp.int32, (C, C), 1)
    return (r <= c).astype(jnp.float32)


def _make_kept_kernel(B_pad, Vt):
    C = _CHUNK
    nC = Vt // C

    def kernel(params_ref, tile_ref, kept_ref):
        top_k = params_ref[:, 0:1]
        inv_t = params_ref[:, 1:2]
        m = params_ref[:, 2:3]
        col_base = params_ref[:, 3:4]
        carry = params_ref[:, 4:5]
        thr = params_ref[:, 5:6]

        e = _masked_exp(tile_ref[...], top_k, inv_t, m, col_base, (B_pad, Vt))
        triu = _chunk_triu(C)
        run = carry
        best = jnp.maximum(carry, 1.0)   # column 0 of the row is always kept
        for c0 in range(nC):
            ec = e[:, c0 * C:(c0 + 1) * C]
            sc = jnp.dot(ec, triu, preferred_element_type=jnp.float32) + run
            kept_c = jnp.max(jnp.where(sc <= thr, sc, 0.0),
                             axis=-1, keepdims=True)
            best = jnp.maximum(best, kept_c)
            run = sc[:, C - 1:C]
        kept_ref[...] = best

    return kernel


def _make_count_kernel(B_pad, Vt):
    C = _CHUNK
    nC = Vt // C

    def kernel(params_ref, tile_ref, cnt_ref):
        top_k = params_ref[:, 0:1]
        inv_t = params_ref[:, 1:2]
        m = params_ref[:, 2:3]
        col_base = params_ref[:, 3:4]
        carry = params_ref[:, 4:5]
        target = params_ref[:, 5:6]

        e = _masked_exp(tile_ref[...], top_k, inv_t, m, col_base, (B_pad, Vt))
        triu = _chunk_triu(C)
        run = carry
        cnt = jnp.zeros((B_pad, 1), jnp.float32)
        for c0 in range(nC):
            ec = e[:, c0 * C:(c0 + 1) * C]
            sc = jnp.dot(ec, triu, preferred_element_type=jnp.float32) + run
            cnt += jnp.sum(jnp.where(sc < target, 1.0, 0.0),
                           axis=-1, keepdims=True)
            run = sc[:, C - 1:C]
        cnt_ref[...] = cnt.astype(jnp.int32)

    return kernel


def _run_resolve(kernel, params, tile, out_dtype):
    B_pad, Vt = tile.shape
    W = params.shape[1]
    return pl.pallas_call(
        kernel,
        out_shape=jax.ShapeDtypeStruct((B_pad, 1), out_dtype),
        grid=(1,),
        in_specs=[
            pl.BlockSpec((B_pad, W), lambda i: (0, 0)),
            pl.BlockSpec((B_pad, Vt), lambda i: (0, 0)),
        ],
        out_specs=pl.BlockSpec((B_pad, 1), lambda i: (0, 0)),
    )(params, tile)


# ---------------------------------------------------------------------------
# Wrapper == Sampler.forward (multinomial path).
# ---------------------------------------------------------------------------
def sampler_forward(token_logits, sampling_params, rand_selector, *,
                    lane_tile=2048):
    """Pallas equivalent of Sampler.forward (do_sample=True).

    token_logits:    (B, V) float32
    sampling_params: (B, 3) float32 -> [top_k, top_p, temperature]
    rand_selector:   (B, 1) float32 uniform in [0, 1)
    returns:         (B,)   int32 sampled token ids
    """
    B, V = token_logits.shape
    token_logits = token_logits.astype(jnp.float32)
    sampling_params = sampling_params.astype(jnp.float32)
    rand_selector = rand_selector.astype(jnp.float32)

    # TODO(synk): the descending sort (torch.sort / nxd_topk), the device RNG
    # (rand_like) and the small index gathers have no clean Pallas TPU
    # primitive; they stay as JAX glue around the kernels.
    idx = jnp.argsort(-token_logits, axis=-1).astype(jnp.int32)
    sorted_logits = jnp.take_along_axis(token_logits, idx, axis=-1)

    # --- padding / tiling ---------------------------------------------------
    B_pad = max(8, _round_up(B, 8))
    Vt = min(_round_up(lane_tile, 128), _round_up(V, 128))
    V_pad = _round_up(V, Vt)
    nT = V_pad // Vt
    Bt = B_pad if B_pad <= 32 else 8

    pad_rows = B_pad - B
    pad_cols = V_pad - V

    # vocab padding behaves like top_k-masked columns; padded batch rows get a
    # single 0.0 "winner" logit and harmless sampling params.
    sorted_p = jnp.pad(sorted_logits, ((0, 0), (0, pad_cols)),
                       constant_values=IGNORED_LOGITS_VALUE)
    sorted_p = jnp.pad(sorted_p, ((0, pad_rows), (0, 0)), constant_values=0.0)

    top_k = sampling_params[:, 0:1]
    top_p = sampling_params[:, 1:2]
    inv_temp = 1.0 / sampling_params[:, 2:3]
    top_k_p = jnp.pad(top_k, ((0, pad_rows), (0, 0)), constant_values=1.0)
    top_p_p = jnp.pad(top_p, ((0, pad_rows), (0, 0)), constant_values=1.0)
    inv_t_p = jnp.pad(inv_temp, ((0, pad_rows), (0, 0)), constant_values=1.0)
    rand_p = jnp.pad(rand_selector, ((0, pad_rows), (0, 0)), constant_values=0.5)

    # Row max of the masked / temperature-scaled logits: with a descending
    # sort, top_k >= 1 and a positive temperature, this is just column 0.
    # TODO(synk): top_k == 0, temperature <= 0, or every logit below
    # IGNORED_LOGITS_VALUE are not handled (degenerate in the torch ref too).
    m = sorted_p[:, 0:1] * inv_t_p

    params1 = jnp.concatenate([top_k_p, inv_t_p, m], axis=-1)   # (B_pad, 3)

    # --- pass 1: per-tile softmax-numerator sums -----------------------------
    tile_sums = _tile_sums(sorted_p, params1, Bt, Vt, nT)       # (B_pad, nT)

    # tile-boundary carries (exclusive prefix over tiles) and total mass Z
    excl = jnp.concatenate(
        [jnp.zeros((B_pad, 1), jnp.float32),
         jnp.cumsum(tile_sums, axis=-1)], axis=-1)              # (B_pad, nT+1)
    Z = excl[:, nT:nT + 1]

    # min over the REAL batch of the first normalised cumsum column == 1/Z
    gmin = jnp.min(1.0 / Z[:B])
    thr = jnp.maximum(gmin, top_p_p) * Z        # unnormalised top_p threshold

    sorted3 = sorted_p.reshape(B_pad, nT, Vt)

    def straddle(limit):
        # last tile whose starting carry is below `limit` (cumsum is monotone)
        t = jnp.sum((excl[:, :nT] < limit).astype(jnp.int32),
                    axis=-1, keepdims=True) - 1
        t = jnp.clip(t, 0, nT - 1)
        carry = jnp.take_along_axis(excl, t, axis=-1)
        tile = jnp.take_along_axis(sorted3, t[:, :, None], axis=1)[:, 0, :]
        return t, carry, tile

    # --- resolve the kept-prefix mass (top_p) --------------------------------
    t1, carry1, tile1 = straddle(thr)
    params_k = jnp.concatenate(
        [top_k_p, inv_t_p, m, (t1 * Vt).astype(jnp.float32), carry1, thr],
        axis=-1)
    kept = _run_resolve(_make_kept_kernel(B_pad, Vt), params_k, tile1,
                        jnp.float32)                             # (B_pad, 1)

    # --- resolve the multinomial count ---------------------------------------
    target = rand_p * kept
    t2, carry2, tile2 = straddle(target)
    params_c = jnp.concatenate(
        [top_k_p, inv_t_p, m, (t2 * Vt).astype(jnp.float32), carry2, target],
        axis=-1)
    cnt_in = _run_resolve(_make_count_kernel(B_pad, Vt), params_c, tile2,
                          jnp.int32)                             # (B_pad, 1)

    counts = jnp.minimum(t2 * Vt + cnt_in, V - 1)[:B]
    return jnp.take_along_axis(idx, counts, axis=-1).reshape(-1)


# ---------------------------------------------------------------------------
# Pure-JAX transcription of the PyTorch reference (for the test).
# ---------------------------------------------------------------------------
def sampler_reference(token_logits, sampling_params, rand_selector):
    B, V = token_logits.shape
    top_k = sampling_params[:, 0:1]
    top_p = sampling_params[:, 1:2]
    temperature = sampling_params[:, 2:3]

    idx = jnp.argsort(-token_logits, axis=-1).astype(jnp.int32)
    sorted_logits = jnp.take_along_axis(token_logits, idx, axis=-1)

    col = jnp.arange(V, dtype=jnp.float32)[None, :]
    vals = jnp.where(col >= top_k, IGNORED_LOGITS_VALUE,
                     sorted_logits) / temperature
    probs = jax.nn.softmax(vals, axis=-1)
    triu = jnp.triu(jnp.ones((V, V), jnp.float32))
    cum = probs @ triu
    top_p_eff = jnp.maximum(jnp.min(cum), top_p)
    mask = (cum > top_p_eff) & (jnp.arange(V)[None, :] > 0)
    vals2 = jnp.where(mask, IGNORED_LOGITS_VALUE, vals)
    probs2 = jax.nn.softmax(vals2, axis=-1)
    cum2 = probs2 @ triu
    counts = jnp.sum((rand_selector > cum2).astype(jnp.int32),
                     axis=-1, keepdims=True)
    counts = jnp.minimum(counts, V - 1)
    return jnp.take_along_axis(idx, counts, axis=-1).reshape(-1)


if __name__ == "__main__":
    key = jax.random.PRNGKey(0)
    k_logits, k_rand = jax.random.split(key)

    B, V = 5, 1000
    token_logits = jax.random.normal(k_logits, (B, V), dtype=jnp.float32) * 3.0

    # sampling_params rows: [top_k, top_p, temperature]
    sampling_params = jnp.array(
        [[5.0, 0.90, 1.0],
         [1.0, 1.00, 0.8],        # greedy-equivalent row (top_k=1, top_p=1)
         [50.0, 0.70, 1.2],
         [10.0, 0.95, 0.5],
         [1000.0, 0.98, 3.0]],    # flat row -> exercises multi-tile straddle
        dtype=jnp.float32,
    )
    rand_selector = jax.random.uniform(k_rand, (B, 1), dtype=jnp.float32)

    ref_tokens = np.asarray(jax.block_until_ready(
        sampler_reference(token_logits, sampling_params, rand_selector)))

    # Run with two tilings: one vocab tile (default) and 4 tiles (lane_tile=256)
    for lt in (2048, 256):
        tokens = jax.block_until_ready(
            sampler_forward(token_logits, sampling_params, rand_selector,
                            lane_tile=lt))
        tokens_np = np.asarray(tokens)
        assert tokens_np.shape == (B,)
        assert np.all(tokens_np >= 0) and np.all(tokens_np < V)
        # Row 1 uses top_k=1 / top_p=1.0 -> must equal the argmax token.
        assert int(tokens_np[1]) == int(np.argmax(np.asarray(token_logits)[1]))
        assert np.array_equal(tokens_np, ref_tokens), (lt, tokens_np, ref_tokens)

    print("KERNEL_OK")
</pallas_src>

<mosaic_0001>
module attributes {stable_mosaic.version = 11 : i64} {
  func.func @kernel(%arg0: i32, %arg1: i32, %arg2: memref<8x3xf32, #tpu.memory_space<vmem>>, %arg3: memref<8x1024xf32, #tpu.memory_space<vmem>>, %arg4: memref<8x1xf32, #tpu.memory_space<vmem>>) attributes {dimension_semantics = [#tpu.dimension_semantics<parallel>, #tpu.dimension_semantics<arbitrary>], iteration_bounds = array<i64: 1, 1>, scalar_prefetch = 0 : i64, scratch_operands = 0 : i64, tpu.core_type = #tpu.core_type<tc>, window_params = [{transform_indices = @transform_0, window_bounds = array<i64: 8, 3>}, {transform_indices = @transform_1, window_bounds = array<i64: 8, 1024>}, {transform_indices = @transform_2, window_bounds = array<i64: 8, 1>}]} {
    %c0 = arith.constant 0 : index
    %c0_0 = arith.constant 0 : index
    %0 = vector.load %arg2[%c0, %c0_0] : memref<8x3xf32, #tpu.memory_space<vmem>>, vector<8x1xf32>
    %c0_1 = arith.constant 0 : index
    %c1 = arith.constant 1 : index
    %1 = vector.load %arg2[%c0_1, %c1] : memref<8x3xf32, #tpu.memory_space<vmem>>, vector<8x1xf32>
    %c0_2 = arith.constant 0 : index
    %c2 = arith.constant 2 : index
    %2 = vector.load %arg2[%c0_2, %c2] : memref<8x3xf32, #tpu.memory_space<vmem>>, vector<8x1xf32>
    %3 = tpu.iota {dimensions = array<i32: 1>} : vector<8x1024xi32>
    %c1024_i32 = arith.constant 1024 : i32
    %4 = arith.muli %arg1, %c1024_i32 : i32
    %5 = vector.broadcast %4 : i32 to vector<8x1024xi32>
    %6 = arith.addi %3, %5 : vector<8x1024xi32>
    %7 = arith.sitofp %6 : vector<8x1024xi32> to vector<8x1024xf32>
    %8 = vector.broadcast %0 : vector<8x1xf32> to vector<8x1024xf32>
    %9 = arith.cmpf oge, %7, %8 : vector<8x1024xf32>
    %c0_3 = arith.constant 0 : index
    %c0_4 = arith.constant 0 : index
    %10 = vector.load %arg3[%c0_3, %c0_4] : memref<8x1024xf32, #tpu.memory_space<vmem>>, vector<8x1024xf32>
    %cst = arith.constant -3.000000e+03 : f32
    %11 = vector.broadcast %cst : f32 to vector<8x1024xf32>
    %12 = arith.select %9, %11, %10 : vector<8x1024xi1>, vector<8x1024xf32>
    %13 = vector.broadcast %1 : vector<8x1xf32> to vector<8x1024xf32>
    %14 = arith.mulf %12, %13 : vector<8x1024xf32>
    %15 = vector.broadcast %2 : vector<8x1xf32> to vector<8x1024xf32>
    %16 = arith.subf %14, %15 : vector<8x1024xf32>
    %17 = math.exp %16 : vector<8x1024xf32>
    %cst_5 = arith.constant dense<0.000000e+00> : vector<8xf32>
    %18 = vector.multi_reduction <add>, %17, %cst_5 [1] : vector<8x1024xf32> to vector<8xf32>
    %19 = vector.shape_cast %18 : vector<8xf32> to vector<8x1xf32>
    %c0_i32 = arith.constant 0 : i32
    %20 = arith.cmpi eq, %arg1, %c0_i32 : i32
    %21 = arith.extui %20 : i1 to i32
    %c0_i32_6 = arith.constant 0 : i32
    %22 = arith.cmpi ne, %21, %c0_i32_6 : i32
    scf.if %22 {
      %cst_12 = arith.constant 0.000000e+00 : f32
      %31 = vector.broadcast %cst_12 : f32 to vector<8x1xf32>
      %c0_13 = arith.constant 0 : index
      %c0_14 = arith.constant 0 : index
      %32 = vector.load %arg4[%c0_13, %c0_14] : memref<8x1xf32, #tpu.memory_space<vmem>>, vector<8x1xf32>
      tpu.vector_store %arg4[%c0_13, %c0_14], %31 {strides = array<i32>} : memref<8x1xf32, #tpu.memory_space<vmem>>, vector<8x1xf32>,
    } else {
    }
    %23 = tpu.iota {dimensions = array<i32: 1>} : vector<8x1xi32>
    %24 = vector.broadcast %arg1 : i32 to vector<8x1xi32>
    %25 = arith.cmpi eq, %23, %24 : vector<8x1xi32>
    %c0_7 = arith.constant 0 : index
    %c0_8 = arith.constant 0 : index
    %26 = vector.load %arg4[%c0_7, %c0_8] : memref<8x1xf32, #tpu.memory_space<vmem>>, vector<8x1xf32>
    %cst_9 = arith.constant 0.000000e+00 : f32
    %27 = vector.broadcast %cst_9 : f32 to vector<8x1xf32>
    %28 = arith.select %25, %19, %27 : vector<8x1xi1>, vector<8x1xf32>
    %29 = arith.addf %26, %28 : vector<8x1xf32>
    %c0_10 = arith.constant 0 : index
    %c0_11 = arith.constant 0 : index
    %30 = vector.load %arg4[%c0_10, %c0_11] : memref<8x1xf32, #tpu.memory_space<vmem>>, vector<8x1xf32>
    tpu.vector_store %arg4[%c0_10, %c0_11], %29 {strides = array<i32>} : memref<8x1xf32, #tpu.memory_space<vmem>>, vector<8x1xf32>,
    return
  }
  func.func @transform_0(%arg0: i32, %arg1: i32) -> (i32, i32) {
    %c0_i32 = arith.constant 0 : i32
    %c0_i32_0 = arith.constant 0 : i32
    return %arg0, %c0_i32 : i32, i32
  }
  func.func @transform_1(%arg0: i32, %arg1: i32) -> (i32, i32) {
    %c0_i32 = arith.constant 0 : i32
    return %arg0, %arg1 : i32, i32
  }
  func.func @transform_2(%arg0: i32, %arg1: i32) -> (i32, i32) {
    %c0_i32 = arith.constant 0 : i32
    %c0_i32_0 = arith.constant 0 : i32
    return %arg0, %c0_i32 : i32, i32
  }
}

</mosaic_0001>

<bundles_post_ra>
// kernel: tpu_custom_call.1
= control target key start
LH: loop header
LB: loop body
LE: loop exit
PB: predicated region body
PF: predicated region fallthrough
CT: control target
= control target key end

     0   :  { %7 = vsyncpa [#allocation3], 0  ;;  %s194_s9 = smov [#allocation2]   ;;  %s278_s0 = inlined_call_operand.vmem [shape: f32[8,3], index: 0, kind: input, shape index: {}]   ;;  %s279_s1 = inlined_call_operand.hbm [shape: f32[8,1024], index: 1, kind: input, shape index: {}]   ;;  %s280_s2 = inlined_call_operand.vmem [shape: f32[8,1], index: 2, kind: output, shape index: {}]  }
   0x1   :  { %s16_s10 = sshll.u32 %s194_s9, 4  ;;  %s17_s10 = int_to_ptr.vmem [resolvable:$true] %s16_s10 }
   0x2   :  { %s180_s11 = scalar_lea.vmem %s17_s10, 1024  ;;  %p185_p1 = scmp.lt.s32.totalorder %s17_s10, %s17_s10 }
   0x3   :  { %p181_p0 = scmp.ne.s32.totalorder %s17_s10, %s180_s11  ;;  %p186_p2 = scmp.lt.s32.totalorder %s180_s11, %s180_s11 }
   0x5   :  { %p187_p3 = por %p186_p2, %p185_p1 }
   0x7   :  { %p188_p4 = pnand %p187_p3, %p181_p0 }
   0x9   :  { %191 = shalt.err (!%p188_p4)
}
   0xa   :  { %19 = dma.hbm_to_vmem [thread:$0]  %s279_s1, 1024, %s17_s10, [#allocation3]  }
   0xb   :  { %192 = dma.done.wait [#allocation3], 1024  }
   0xc   :  { %193 = vsyncadd [#allocation3], 4294966272  ;;  %v195_v0 = vmov 0   ;;  %v196_v1 = vmov 2   ;;  %v23_v2 = vld [vmem:[%s278_s0] sm:$0xff]  ;;  %v197_v3 = vmov 1   ;;  %v24_v5 = vlaneseq }
   0xd   :  { %152 = vset.pattern.permute.xlu0 %v195_v0  ;;  %154 = vset.pattern.permute.xlu1 %v196_v1  ;;  %vm133_vm0 = vcmask 7168   ;;  %v198_v4 = vmov 0.0   ;;  %v64_v22 = vld [vmem:[#allocation2] sm:$0xff]  ;;  %v65_v23 = vld [vmem:[#allocation2 + $0x8] sm:$0xff]  ;;  %v66_v28 = vld [vmem:[#allocation2 + $0x10] sm:$0xff] }
   0xe   :  { %53 = vperm.xlu0 %152, %v23_v2   ;;  %93 = vperm.xlu1 %154, %v23_v2   ;;  %134 = vst.msk [vmem:[%s280_s2] sm:$0xff] %vm133_vm0, %v198_v4  ;;  %v224_v6 = vand.u32 127, %v24_v5  ;;  %v67_v29 = vld [vmem:[#allocation2 + $0x18] sm:$0xff]  ;;  %v68_v30 = vld [vmem:[#allocation2 + $0x20] sm:$0xff]  ;;  %v69_v35 = vld [vmem:[#allocation2 + $0x28] sm:$0xff] }
   0xf   :  { %v70_v46 = vld [vmem:[#allocation2 + $0x30] sm:$0xff]  ;;  %v71_v52 = vld [vmem:[#allocation2 + $0x38] sm:$0xff] }
  0x10   :  { %v26_v7 = vadd.s32 128, %v224_v6  ;;  %v27_v8 = vadd.s32 256, %v224_v6  ;;  %v28_v9 = vadd.s32 384, %v224_v6  ;;  %v29_v10 = vadd.s32 512, %v224_v6 }
  0x11   :  { %v30_v11 = vadd.s32 640, %v224_v6  ;;  %v43_v12 = vcvt.s32.f32 %v224_v6  ;;  %v31_v17 = vadd.s32 768, %v224_v6  ;;  %v32_v19 = vadd.s32 896, %v224_v6 }
  0x12   :  { %153 = vset.pattern.permute.xlu0 %v197_v3  ;;  %v44_v13 = vcvt.s32.f32 %v26_v7  ;;  %v45_v14 = vcvt.s32.f32 %v27_v8  ;;  %v46_v15 = vcvt.s32.f32 %v28_v9  ;;  %v47_v16 = vcvt.s32.f32 %v29_v10 }
  0x13   :  { %81 = vperm.xlu0 %153, %v23_v2   ;;  %v48_v20 = vcvt.s32.f32 %v30_v11  ;;  %v49_v31 = vcvt.s32.f32 %v31_v17  ;;  %v50_v32 = vcvt.s32.f32 %v32_v19  ;;  %vm136_vm9 = vcmp.eq.s32.totalorder %v224_v6, 0 }
  0x17   :  { %155 = vset.pattern.permute.xlu0 %v196_v1 }
  0x89   :  { %v54_v18 = vpop.permute.xlu0 %53  ;;  %v94_v41 = vpop.permute.xlu1 %93 }
  0x8a   :  { %vm234_vm1 = vcmp.ge.f32.partialorder %v43_v12, %v54_v18  ;;  %vm238_vm2 = vcmp.ge.f32.partialorder %v44_v13, %v54_v18  ;;  %vm242_vm3 = vcmp.ge.f32.partialorder %v45_v14, %v54_v18  ;;  %vm246_vm4 = vcmp.ge.f32.partialorder %v46_v15, %v54_v18 }
  0x8b   :  { %vm250_vm5 = vcmp.ge.f32.partialorder %v47_v16, %v54_v18  ;;  %vm254_vm6 = vcmp.ge.f32.partialorder %v48_v20, %v54_v18  ;;  %v72_v34 = vsel %vm234_vm1, -3000.0, %v64_v22  ;;  %v73_v36 = vsel %vm238_vm2, -3000.0, %v65_v23  ;;  %v137_v23 = vld [vmem:[%s280_s2] sm:$0xff] }
  0x8c   :  { %v74_v37 = vsel %vm242_vm3, -3000.0, %v66_v28  ;;  %v75_v38 = vsel %vm246_vm4, -3000.0, %v67_v29  ;;  %v76_v39 = vsel %vm250_vm5, -3000.0, %v68_v30  ;;  %vm62_vm7 = vcmp.ge.f32.partialorder %v49_v31, %v54_v18 }
  0x8d   :  { %v77_v48 = vsel %vm254_vm6, -3000.0, %v69_v35  ;;  %vm63_vm8 = vcmp.ge.f32.partialorder %v50_v32, %v54_v18  ;;  %v78_v55 = vsel %vm62_vm7, -3000.0, %v70_v46 }
  0x8e   :  { %v82_v40 = vpop.permute.xlu0 %81  ;;  %v79_v61 = vsel %vm63_vm8, -3000.0, %v71_v52 }
  0x8f   :  { %v84_v42 = vmul.f32 %v82_v40, %v72_v34  ;;  %v85_v43 = vmul.f32 %v82_v40, %v73_v36  ;;  %v86_v44 = vmul.f32 %v82_v40, %v74_v37  ;;  %v87_v45 = vmul.f32 %v82_v40, %v75_v38 }
  0x90   :  { %v88_v47 = vmul.f32 %v82_v40, %v76_v39  ;;  %v89_v53 = vmul.f32 %v82_v40, %v77_v48  ;;  %v90_v58 = vmul.f32 %v82_v40, %v78_v55  ;;  %v91_v62 = vmul.f32 %v82_v40, %v79_v61 }
  0x91   :  { %v96_v49 = vsub.f32 %v84_v42, %v94_v41  ;;  %v97_v50 = vsub.f32 %v85_v43, %v94_v41  ;;  %v98_v51 = vsub.f32 %v86_v44, %v94_v41  ;;  %v99_v54 = vsub.f32 %v87_v45, %v94_v41 }
  0x92   :  { %v100_v59 = vsub.f32 %v88_v47, %v94_v41  ;;  %v101_v63 = vsub.f32 %v89_v53, %v94_v41  ;;  %v102_v2 = vsub.f32 %v90_v58, %v94_v41  ;;  %v103_v3 = vsub.f32 %v91_v62, %v94_v41 }
  0x93   :  { %v104_v56 = vmul.f32 1.442695, %v96_v49  ;;  %v106_v57 = vmul.f32 1.442695, %v97_v50  ;;  %v108_v60 = vmul.f32 1.442695, %v98_v51 }
  0x94   :  { %v110_v0 = vmul.f32 1.442695, %v99_v54  ;;  %v112_v1 = vmul.f32 1.442695, %v100_v59  ;;  %v114_v4 = vmul.f32 1.442695, %v101_v63 }
  0x95   :  { %156 = vpow2.f32 %v104_v56  ;;  %v116_v5 = vmul.f32 1.442695, %v102_v2  ;;  %v118_v7 = vmul.f32 1.442695, %v103_v3 }
  0x96   :  { %158 = vpow2.f32 %v106_v57 }
  0x97   :  { %160 = vpow2.f32 %v108_v60 }
  0x98   :  { %162 = vpow2.f32 %v110_v0 }
  0x99   :  { %164 = vpow2.f32 %v112_v1 }
  0x9a   :  { %166 = vpow2.f32 %v114_v4 }
  0x9b   :  { %168 = vpow2.f32 %v116_v5 }
  0x9c   :  { %170 = vpow2.f32 %v118_v7 }
  0xa2   :  { %v157_v8 = vpop.eup %156 }
  0xa3   :  { %v159_v9 = vpop.eup %158 }
  0xa4   :  { %v120_v10 = vadd.f32 %v159_v9, %v157_v8  ;;  %v161_v11 = vpop.eup %160 }
  0xa5   :  { %v163_v13 = vpop.eup %162 }
  0xa6   :  { %v121_v12 = vadd.f32 %v161_v11, %v120_v10  ;;  %v165_v15 = vpop.eup %164 }
  0xa7   :  { %v167_v17 = vpop.eup %166 }
  0xa8   :  { %v122_v14 = vadd.f32 %v163_v13, %v121_v12  ;;  %v169_v19 = vpop.eup %168 }
  0xa9   :  { %v171_v21 = vpop.eup %170 }
  0xaa   :  { %v123_v16 = vadd.f32 %v165_v15, %v122_v14 }
  0xac   :  { %v124_v18 = vadd.f32 %v167_v17, %v123_v16 }
  0xae   :  { %v125_v20 = vadd.f32 %v169_v19, %v124_v18 }
  0xb0   :  { %v126_v22 = vadd.f32 %v171_v21, %v125_v20 }
  0xb2   :  { %127 = vadd.xlane.f32.xlu1 %v126_v22 }
 0x13b   :  { %v128_v24 = vpop.xlane.xlu1 %127 }
 0x13c   :  { %v138_v25 = vsel %vm136_vm9, %v128_v24, 0.0 }
 0x13d   :  { %v139_v26 = vadd.f32 %v138_v25, %v137_v23 }
 0x13f   :  { %141 = vst.msk [vmem:[%s280_s2] sm:$0xff] %vm133_vm0, %v139_v26 }
 0x140   :  { %146 = vsyncpa [#allocation3], 1 }

</bundles_post_ra>
